<compile_context>
chip_gen: v6e
topology: v6e:2x2x1
jax: 0.10.0
libtpu: 0.0.40
codegen_flags: <defaults>
</compile_context>

<pallas_src>
import functools

import jax
import jax.numpy as jnp
from jax.experimental import pallas as pl
from jax.experimental.pallas import tpu as pltpu

# ----------------------- model hyper-parameters (small) ----------------------
C_IN = 4          # input channels
H = 8             # spatial height
W = 8             # spatial width
HID = 32          # conv output channels / hidden size
OUT = 16          # ImageEncoderWrapper.output_size
KH = KW = 3       # conv kernel, padding=1 (SAME)
HW = H * W
KCIN = KH * KW * C_IN          # 36 = im2col K dimension

TILE_N_MAX = 128               # images per grid step (VMEM-safe on all gens)


def _round_up(x, m):
    return ((x + m - 1) // m) * m


# ------------------------------- Pallas kernel --------------------------------
def _encoder_kernel(xc_ref, wc_ref, bc_ref, wf_ref, bf_ref, o_ref,
                    *, tile_n, hw, hid):
    """Encode `tile_n` images in one shot.

    xc_ref : (tile_n*hw, 9*C_IN)  im2col patch rows for tile_n images
    wc_ref : (9*C_IN, hid)        conv weights, tap-major, flattened
    bc_ref : (1, hid)             conv bias
    wf_ref : (hid, OUT)           fc weights
    bf_ref : (1, OUT)             fc bias
    o_ref  : (tile_n, OUT)        encoded outputs
    """
    # 3x3 SAME conv over the whole image block == one im2col matmul on the MXU.
    acc = jnp.dot(xc_ref[...], wc_ref[...],
                  preferred_element_type=jnp.float32)           # (tile_n*hw, hid)
    acc = jnp.maximum(acc + bc_ref[...], 0.0)                   # bias + ReLU

    # Global average pool per image: segmented sublane reduction over hw rows
    # (hw = 64 is a multiple of 8, so the reshape keeps (8,128) tiles intact).
    pooled = jnp.sum(acc.reshape(tile_n, hw, hid), axis=1) * (1.0 / hw)

    out = jnp.dot(pooled, wf_ref[...],
                  preferred_element_type=jnp.float32) + bf_ref[...]
    o_ref[...] = out.astype(o_ref.dtype)


def encode_images_pallas(x_flat_nchw, wc, bc, wf, bf):
    """Run the synthetic encoder on a flat batch of images.

    x_flat_nchw : (N, C_IN, H, W) float32
    wc          : (HID, C_IN, 3, 3)  (PyTorch OIHW conv weight)
    bc          : (HID,)
    wf          : (HID, OUT)
    bf          : (OUT,)
    returns     : (N, OUT) float32
    """
    n = x_flat_nchw.shape[0]
    tile_n = min(TILE_N_MAX, _round_up(n, 8))
    n_pad = _round_up(n, tile_n)

    # ---- glue (XLA side): im2col into a lane-dense 2-D layout ----------------
    # TODO(synk): for very large batches this materializes a 9x-expanded patch
    # matrix in HBM; an in-kernel im2col from the raw NHWC block would avoid it.
    x = x_flat_nchw
    if n_pad != n:
        x = jnp.pad(x, ((0, n_pad - n), (0, 0), (0, 0), (0, 0)))
    x_nhwc = jnp.transpose(x, (0, 2, 3, 1))                         # (Np, H, W, C)
    x_halo = jnp.pad(x_nhwc, ((0, 0), (1, 1), (1, 1), (0, 0)))      # SAME halo
    patches = [x_halo[:, dy:dy + H, dx:dx + W, :]
               for dy in range(KH) for dx in range(KW)]
    x_col = jnp.concatenate(patches, axis=-1)                       # (Np,H,W,9C)
    x_col = x_col.reshape(n_pad * HW, KCIN)                         # lane-dense 2-D

    # Conv weight OIHW -> (ky, kx, Cin, HID) -> (9*Cin, HID); matches patch order.
    wc2d = jnp.transpose(wc, (2, 3, 1, 0)).reshape(KCIN, HID)
    bc2d = bc.reshape(1, HID)
    bf2d = bf.reshape(1, OUT)

    kernel = functools.partial(_encoder_kernel, tile_n=tile_n, hw=HW, hid=HID)

    out = pl.pallas_call(
        kernel,
        out_shape=jax.ShapeDtypeStruct((n_pad, OUT), jnp.float32),
        grid=(n_pad // tile_n,),
        in_specs=[
            pl.BlockSpec((tile_n * HW, KCIN), lambda i: (i, 0)),
            pl.BlockSpec((KCIN, HID), lambda i: (0, 0)),
            pl.BlockSpec((1, HID), lambda i: (0, 0)),
            pl.BlockSpec((HID, OUT), lambda i: (0, 0)),
            pl.BlockSpec((1, OUT), lambda i: (0, 0)),
        ],
        out_specs=pl.BlockSpec((tile_n, OUT), lambda i: (i, 0)),
        compiler_params=pltpu.CompilerParams(
            dimension_semantics=("parallel",)),   # lets v7x use both TCs
    )(x_col, wc2d, bc2d, wf, bf2d)

    return out[:n]


def image_encoder_wrapper(inputs, wc, bc, wf, bf):
    """Pallas-backed equivalent of ImageEncoderWrapper.forward.

    inputs : (..., C_IN, H, W); leading dims are flattened for encoding and
             restored on the output, exactly like the PyTorch view/view.
    """
    lead = inputs.shape[:-3]
    x_flat = inputs.reshape((-1,) + inputs.shape[-3:])        # view(-1, C, H, W)
    enc = encode_images_pallas(x_flat, wc, bc, wf, bf)        # (N, OUT)
    return enc.reshape(lead + (enc.shape[-1],))               # view(*lead, OUT)


# ------------------------------ pure-JAX reference ----------------------------
def _encoder_ref(x_flat_nchw, wc, bc, wf, bf):
    y = jax.lax.conv_general_dilated(
        x_flat_nchw, wc, window_strides=(1, 1), padding="SAME",
        dimension_numbers=("NCHW", "OIHW", "NCHW"))
    y = y + bc[None, :, None, None]
    y = jnp.maximum(y, 0.0)
    pooled = jnp.mean(y, axis=(2, 3))
    return pooled @ wf + bf


# ------------------------------------ main -------------------------------------
if __name__ == "__main__":
    key = jax.random.PRNGKey(0)
    k_x, k_wc, k_bc, k_wf, k_bf = jax.random.split(key, 5)

    # inputs: leading dims (batch=2, seq=3), then (C, H, W)
    x = jax.random.normal(k_x, (2, 3, C_IN, H, W), dtype=jnp.float32)

    # Deterministic synthetic encoder parameters.
    wc = jax.random.normal(k_wc, (HID, C_IN, KH, KW), dtype=jnp.float32) * 0.1
    bc = jax.random.normal(k_bc, (HID,), dtype=jnp.float32) * 0.1
    wf = jax.random.normal(k_wf, (HID, OUT), dtype=jnp.float32) * 0.1
    bf = jax.random.normal(k_bf, (OUT,), dtype=jnp.float32) * 0.1

    out = image_encoder_wrapper(x, wc, bc, wf, bf)
    out = jax.block_until_ready(out)

    assert out.shape == (2, 3, OUT), out.shape

    # Cross-check against a pure-JAX reference of the same encoder.
    x_flat = x.reshape(-1, C_IN, H, W)
    ref = _encoder_ref(x_flat, wc, bc, wf, bf).reshape(2, 3, OUT)
    assert jnp.allclose(out, ref, atol=1e-4, rtol=1e-4), (
        float(jnp.max(jnp.abs(out - ref))))

    print("KERNEL_OK")
</pallas_src>

<mosaic_0001>
module attributes {stable_mosaic.version = 11 : i64} {
  func.func @_encoder_kernel(%arg0: i32, %arg1: memref<512x36xf32, #tpu.memory_space<vmem>>, %arg2: memref<36x32xf32, #tpu.memory_space<vmem>>, %arg3: memref<1x32xf32, #tpu.memory_space<vmem>>, %arg4: memref<32x16xf32, #tpu.memory_space<vmem>>, %arg5: memref<1x16xf32, #tpu.memory_space<vmem>>, %arg6: memref<8x16xf32, #tpu.memory_space<vmem>>) attributes {dimension_semantics = [#tpu.dimension_semantics<parallel>], iteration_bounds = array<i64: 1>, scalar_prefetch = 0 : i64, scratch_operands = 0 : i64, tpu.core_type = #tpu.core_type<tc>, window_params = [{transform_indices = @transform_0, window_bounds = array<i64: 512, 36>}, {pipeline_mode = #tpu.pipeline_mode<synchronous>, transform_indices = @transform_1, window_bounds = array<i64: 36, 32>}, {pipeline_mode = #tpu.pipeline_mode<synchronous>, transform_indices = @transform_2, window_bounds = array<i64: 1, 32>}, {pipeline_mode = #tpu.pipeline_mode<synchronous>, transform_indices = @transform_3, window_bounds = array<i64: 32, 16>}, {pipeline_mode = #tpu.pipeline_mode<synchronous>, transform_indices = @transform_4, window_bounds = array<i64: 1, 16>}, {transform_indices = @transform_5, window_bounds = array<i64: 8, 16>}]} {
    %c0 = arith.constant 0 : index
    %c0_0 = arith.constant 0 : index
    %0 = vector.load %arg1[%c0, %c0_0] : memref<512x36xf32, #tpu.memory_space<vmem>>, vector<512x36xf32>
    %c0_1 = arith.constant 0 : index
    %c0_2 = arith.constant 0 : index
    %1 = vector.load %arg2[%c0_1, %c0_2] : memref<36x32xf32, #tpu.memory_space<vmem>>, vector<36x32xf32>
    %cst = arith.constant dense<0.000000e+00> : vector<512x32xf32>
    %2 = tpu.matmul %0, %1, %cst {dimension_numbers = #tpu.dot_dimension_numbers<[1], [0], [0], [1], [0, 0, 1, 1], [], []>} : vector<512x36xf32>, vector<36x32xf32>, vector<512x32xf32> -> vector<512x32xf32>
    %c0_3 = arith.constant 0 : index
    %c0_4 = arith.constant 0 : index
    %3 = vector.load %arg3[%c0_3, %c0_4] : memref<1x32xf32, #tpu.memory_space<vmem>>, vector<1x32xf32>
    %4 = vector.broadcast %3 : vector<1x32xf32> to vector<512x32xf32>
    %5 = arith.addf %2, %4 : vector<512x32xf32>
    %cst_5 = arith.constant 0.000000e+00 : f32
    %6 = vector.broadcast %cst_5 : f32 to vector<512x32xf32>
    %7 = arith.maximumf %5, %6 : vector<512x32xf32>
    %8 = vector.shape_cast %7 : vector<512x32xf32> to vector<8x64x32xf32>
    %cst_6 = arith.constant dense<0.000000e+00> : vector<8x32xf32>
    %9 = vector.multi_reduction <add>, %8, %cst_6 [1] : vector<8x64x32xf32> to vector<8x32xf32>
    %cst_7 = arith.constant 1.562500e-02 : f32
    %10 = vector.broadcast %cst_7 : f32 to vector<8x32xf32>
    %11 = arith.mulf %9, %10 : vector<8x32xf32>
    %c0_8 = arith.constant 0 : index
    %c0_9 = arith.constant 0 : index
    %12 = vector.load %arg4[%c0_8, %c0_9] : memref<32x16xf32, #tpu.memory_space<vmem>>, vector<32x16xf32>
    %cst_10 = arith.constant dense<0.000000e+00> : vector<8x16xf32>
    %13 = tpu.matmul %11, %12, %cst_10 {dimension_numbers = #tpu.dot_dimension_numbers<[1], [0], [0], [1], [0, 0, 1, 1], [], []>} : vector<8x32xf32>, vector<32x16xf32>, vector<8x16xf32> -> vector<8x16xf32>
    %c0_11 = arith.constant 0 : index
    %c0_12 = arith.constant 0 : index
    %14 = vector.load %arg5[%c0_11, %c0_12] : memref<1x16xf32, #tpu.memory_space<vmem>>, vector<1x16xf32>
    %15 = vector.broadcast %14 : vector<1x16xf32> to vector<8x16xf32>
    %16 = arith.addf %13, %15 : vector<8x16xf32>
    %c0_13 = arith.constant 0 : index
    %c0_14 = arith.constant 0 : index
    %17 = vector.load %arg6[%c0_13, %c0_14] : memref<8x16xf32, #tpu.memory_space<vmem>>, vector<8x16xf32>
    tpu.vector_store %arg6[%c0_13, %c0_14], %16 {strides = array<i32>} : memref<8x16xf32, #tpu.memory_space<vmem>>, vector<8x16xf32>,
    return
  }
  func.func @transform_0(%arg0: i32) -> (i32, i32) {
    %c0_i32 = arith.constant 0 : i32
    %c0_i32_0 = arith.constant 0 : i32
    return %arg0, %c0_i32 : i32, i32
  }
  func.func @transform_1(%arg0: i32) -> (i32, i32) {
    %c0_i32 = arith.constant 0 : i32
    %c0_i32_0 = arith.constant 0 : i32
    %c0_i32_1 = arith.constant 0 : i32
    return %c0_i32, %c0_i32_0 : i32, i32
  }
  func.func @transform_2(%arg0: i32) -> (i32, i32) {
    %c0_i32 = arith.constant 0 : i32
    %c0_i32_0 = arith.constant 0 : i32
    %c0_i32_1 = arith.constant 0 : i32
    return %c0_i32, %c0_i32_0 : i32, i32
  }
  func.func @transform_3(%arg0: i32) -> (i32, i32) {
    %c0_i32 = arith.constant 0 : i32
    %c0_i32_0 = arith.constant 0 : i32
    %c0_i32_1 = arith.constant 0 : i32
    return %c0_i32, %c0_i32_0 : i32, i32
  }
  func.func @transform_4(%arg0: i32) -> (i32, i32) {
    %c0_i32 = arith.constant 0 : i32
    %c0_i32_0 = arith.constant 0 : i32
    %c0_i32_1 = arith.constant 0 : i32
    return %c0_i32, %c0_i32_0 : i32, i32
  }
  func.func @transform_5(%arg0: i32) -> (i32, i32) {
    %c0_i32 = arith.constant 0 : i32
    %c0_i32_0 = arith.constant 0 : i32
    return %arg0, %c0_i32 : i32, i32
  }
}

</mosaic_0001>

<bundles_post_ra>
// kernel: tpu_custom_call.1
= control target key start
LH: loop header
LB: loop body
LE: loop exit
PB: predicated region body
PF: predicated region fallthrough
CT: control target
= control target key end

     0   :  { %vm290_vm0 = vcmask 1043456   ;;  %vm97_vm1 = vcmask 293888   ;;  %s1853_s0 = inlined_call_operand.vmem [shape: f32[512,36], index: 0, kind: input, shape index: {}]   ;;  %s1854_s1 = inlined_call_operand.vmem [shape: f32[36,32], index: 1, kind: input, shape index: {}]   ;;  %s1855_s2 = inlined_call_operand.vmem [shape: f32[1,32], index: 2, kind: input, shape index: {}]   ;;  %s1856_s3 = inlined_call_operand.vmem [shape: f32[32,16], index: 3, kind: input, shape index: {}]   ;;  %s1857_s4 = inlined_call_operand.vmem [shape: f32[1,16], index: 4, kind: input, shape index: {}]   ;;  %s1858_s5 = inlined_call_operand.hbm [shape: f32[8,16], index: 5, kind: output, shape index: {}]  }
   0x1   :  { %v89_v0 = vld [vmem:[%s1854_s1 + $0x20] sm:$0xf]  ;;  %v88_v1 = vld [vmem:[%s1854_s1 + $0x18] sm:$0xff]  ;;  %v87_v3 = vld [vmem:[%s1854_s1 + $0x10] sm:$0xff] }
   0x2   :  { %1183 = vmatprep.subr.msk.mxu0 %vm290_vm0, %v89_v0  ;;  %v21_v2 = vld [vmem:[%s1853_s0] sm:$0xff]  ;;  %1300 = vmatprep.subr.msk.mxu1 %vm290_vm0, %v89_v0  ;;  %v86_v4 = vld [vmem:[%s1854_s1 + $0x8] sm:$0xff]  ;;  %v23_v7 = vld [vmem:[%s1853_s0 + $0x10] sm:$0xff] }
   0x3   :  { %1184 = vmatpush3.msk.msra.mxu0 %vm290_vm0, %v89_v0  ;;  %1193 = vmatprep.mubr.msk.f32.mxu0 %vm97_vm1, %v21_v2  ;;  %v85_v5 = vld [vmem:[%s1854_s1] sm:$0xff]  ;;  %v22_v6 = vld [vmem:[%s1853_s0 + $0x8] sm:$0xff]  ;;  %v55_v8 = vld [vmem:[%s1853_s0 + $0x110] sm:$0xff] }
   0x4   :  { %1185 = vmatprep.subr.mxu0 %v88_v1  ;;  %1305 = vmatpush3.msk.msra.mxu1 %vm290_vm0, %v89_v0  ;;  %v56_v9 = vld [vmem:[%s1853_s0 + $0x118] sm:$0xff]  ;;  %v57_v10 = vld [vmem:[%s1853_s0 + $0x120] sm:$0xff]  ;;  %v58_v13 = vld [vmem:[%s1853_s0 + $0x128] sm:$0xff] }
   0x5   :  { %1186 = vmatpush3.msra.mxu0 %v88_v1  ;;  %1301 = vmatprep.subr.mxu1 %v88_v1  ;;  %v24_v11 = vld [vmem:[%s1853_s0 + $0x18] sm:$0xff]  ;;  %v25_v12 = vld [vmem:[%s1853_s0 + $0x20] sm:$0xff]  ;;  %v59_v14 = vld [vmem:[%s1853_s0 + $0x130] sm:$0xff] }
   0x6   :  { %1187 = vmatprep.subr.mxu0 %v87_v3  ;;  %1306 = vmatpush3.msra.mxu1 %v88_v1  ;;  %v26_v15 = vld [vmem:[%s1853_s0 + $0x28] sm:$0xff]  ;;  %v27_v16 = vld [vmem:[%s1853_s0 + $0x30] sm:$0xff]  ;;  %v60_v17 = vld [vmem:[%s1853_s0 + $0x138] sm:$0xff] }
   0x7   :  { %1188 = vmatpush3.msra.mxu0 %v87_v3  ;;  %1302 = vmatprep.subr.mxu1 %v87_v3  ;;  %v61_v18 = vld [vmem:[%s1853_s0 + $0x140] sm:$0xff]  ;;  %v28_v19 = vld [vmem:[%s1853_s0 + $0x38] sm:$0xff]  ;;  %v62_v21 = vld [vmem:[%s1853_s0 + $0x148] sm:$0xff] }
   0x8   :  { %1189 = vmatprep.subr.mxu0 %v86_v4  ;;  %1307 = vmatpush3.msra.mxu1 %v87_v3  ;;  %v29_v20 = vld [vmem:[%s1853_s0 + $0x40] sm:$0xff]  ;;  %v63_v22 = vld [vmem:[%s1853_s0 + $0x150] sm:$0xff] }
   0x9   :  { %1190 = vmatpush3.msra.mxu0 %v86_v4  ;;  %1303 = vmatprep.subr.mxu1 %v86_v4 }
   0xa   :  { %1191 = vmatprep.subr.mxu0 %v85_v5  ;;  %1308 = vmatpush3.msra.mxu1 %v86_v4 }
   0xb   :  { %1192 = vmatpush3.msra.mxu0 %v85_v5  ;;  %1304 = vmatprep.subr.mxu1 %v85_v5 }
   0xc   :  { %1194 = vmatmul.mubr.msk.f32.vlgmr.msra.gmra.mxu0 %vm97_vm1, %v22_v6  ;;  %1309 = vmatpush3.msra.mxu1 %v85_v5 }
   0xd   :  { %1196 = vmatprep.mubr.msk.f32.mxu0 %vm97_vm1, %v23_v7  ;;  %1244 = vmatprep.mubr.msk.f32.mxu1 %vm97_vm1, %v55_v8 }
   0xe   :  { %1245 = vmatmul.mubr.msk.f32.vlgmr.msra.gmra.mxu1 %vm97_vm1, %v56_v9 }
   0xf   :  { %1247 = vmatprep.mubr.msk.f32.mxu1 %vm97_vm1, %v57_v10 }
  0x10   :  { %1197 = vmatmul.mubr.msk.f32.gmra.mxu0 %vm97_vm1, %v24_v11 }
  0x11   :  { %1199 = vmatprep.mubr.msk.f32.mxu0 %vm97_vm1, %v25_v12 }
  0x12   :  { %1248 = vmatmul.mubr.msk.f32.gmra.mxu1 %vm97_vm1, %v58_v13 }
  0x13   :  { %1250 = vmatprep.mubr.msk.f32.mxu1 %vm97_vm1, %v59_v14 }
  0x14   :  { %1200 = vmatmul.mubr.msk.f32.gmra.mxu0 %vm97_vm1, %v26_v15 }
  0x15   :  { %1202 = vmatprep.mubr.msk.f32.mxu0 %vm97_vm1, %v27_v16 }
  0x16   :  { %1251 = vmatmul.mubr.msk.f32.gmra.mxu1 %vm97_vm1, %v60_v17 }
  0x17   :  { %1253 = vmatprep.mubr.msk.f32.mxu1 %vm97_vm1, %v61_v18 }
  0x18   :  { %1203 = vmatmul.mubr.msk.f32.gmra.mxu0 %vm97_vm1, %v28_v19 }
  0x19   :  { %10 = vsyncpa [#allocation3], 0  ;;  %1205 = vmatprep.mubr.msk.f32.mxu0 %vm97_vm1, %v29_v20  ;;  %v30_v23 = vld [vmem:[%s1853_s0 + $0x48] sm:$0xff]  ;;  %v31_v24 = vld [vmem:[%s1853_s0 + $0x50] sm:$0xff]  ;;  %v1335_v6 = vmov 0.0   ;;  %vm1336_vm2 = vmmov 0  }
  0x1a   :  { %1254 = vmatmul.mubr.msk.f32.gmra.mxu1 %vm97_vm1, %v62_v21  ;;  %v64_v25 = vld [vmem:[%s1853_s0 + $0x158] sm:$0xff]  ;;  %v65_v26 = vld [vmem:[%s1853_s0 + $0x160] sm:$0xff]  ;;  %v66_v29 = vld [vmem:[%s1853_s0 + $0x168] sm:$0xff]  ;;  %1289 = vmatprep.subr.mxu1 %v1335_v6  ;;  %vm743_vm3 = vcmask 261120   ;;  %vm939_vm4 = vcmask 1041409   ;;  %vm941_vm5 = vcmask 1042434  }
  0x1b   :  { %1256 = vmatprep.mubr.msk.f32.mxu1 %vm97_vm1, %v63_v22  ;;  %v32_v27 = vld [vmem:[%s1853_s0 + $0x58] sm:$0xff]  ;;  %v33_v28 = vld [vmem:[%s1853_s0 + $0x60] sm:$0xff]  ;;  %v67_v30 = vld [vmem:[%s1853_s0 + $0x170] sm:$0xff]  ;;  %vm943_vm6 = vcmask 1043459   ;;  %vm945_vm7 = vcmask 1044484   ;;  %vm947_vm8 = vcmask 1045509  }
  0x1c   :  { %1206 = vmatmul.mubr.msk.f32.gmra.mxu0 %vm97_vm1, %v30_v23  ;;  %v34_v31 = vld [vmem:[%s1853_s0 + $0x68] sm:$0xff]  ;;  %v35_v32 = vld [vmem:[%s1853_s0 + $0x70] sm:$0xff]  ;;  %v68_v33 = vld [vmem:[%s1853_s0 + $0x178] sm:$0xff]  ;;  %vm949_vm9 = vcmask 1046534   ;;  %vm951_vm10 = vcmask 1047559   ;;  %s1337_s10 = smov [#allocation2]  }
  0x1d   :  { %1208 = vmatprep.mubr.msk.f32.mxu0 %vm97_vm1, %v31_v24  ;;  %v69_v34 = vld [vmem:[%s1853_s0 + $0x180] sm:$0xff]  ;;  %v36_v35 = vld [vmem:[%s1853_s0 + $0x78] sm:$0xff]  ;;  %v70_v37 = vld [vmem:[%s1853_s0 + $0x188] sm:$0xff]  ;;  %s1033_s1 = sshll.u32 %s1337_s10, 4  ;;  %vm1025_vm11 = vcmask 130048   ;;  %s1034_s1 = int_to_ptr.vmem [resolvable:$true] %s1033_s1 }
  0x1e   :  { %1257 = vmatmul.mubr.msk.f32.gmra.mxu1 %vm97_vm1, %v64_v25  ;;  %v37_v36 = vld [vmem:[%s1853_s0 + $0x80] sm:$0xff]  ;;  %v71_v38 = vld [vmem:[%s1853_s0 + $0x190] sm:$0xff]  ;;  %v38_v39 = vld [vmem:[%s1853_s0 + $0x88] sm:$0xff]  ;;  %s1313_s11 = scalar_lea.vmem %s1034_s1, 128  ;;  %p1318_p1 = scmp.lt.s32.totalorder %s1034_s1, %s1034_s1 }
  0x1f   :  { %1259 = vmatprep.mubr.msk.f32.mxu1 %vm97_vm1, %v65_v26  ;;  %v39_v40 = vld [vmem:[%s1853_s0 + $0x90] sm:$0xff]  ;;  %v72_v41 = vld [vmem:[%s1853_s0 + $0x198] sm:$0xff]  ;;  %v73_v42 = vld [vmem:[%s1853_s0 + $0x1a0] sm:$0xff]  ;;  %p1314_p0 = scmp.ne.s32.totalorder %s1034_s1, %s1313_s11  ;;  %p1319_p2 = scmp.lt.s32.totalorder %s1313_s11, %s1313_s11 }
  0x20   :  { %1209 = vmatmul.mubr.msk.f32.gmra.mxu0 %vm97_vm1, %v32_v27  ;;  %v40_v43 = vld [vmem:[%s1853_s0 + $0x98] sm:$0xff]  ;;  %v41_v44 = vld [vmem:[%s1853_s0 + $0xa0] sm:$0xff]  ;;  %v74_v45 = vld [vmem:[%s1853_s0 + $0x1a8] sm:$0xff] }
  0x21   :  { %1211 = vmatprep.mubr.msk.f32.mxu0 %vm97_vm1, %v33_v28  ;;  %v75_v46 = vld [vmem:[%s1853_s0 + $0x1b0] sm:$0xff]  ;;  %v42_v47 = vld [vmem:[%s1853_s0 + $0xa8] sm:$0xff]  ;;  %v76_v49 = vld [vmem:[%s1853_s0 + $0x1b8] sm:$0xff]  ;;  %p1320_p3 = por %p1319_p2, %p1318_p1 }
  0x22   :  { %1260 = vmatmul.mubr.msk.f32.gmra.mxu1 %vm97_vm1, %v66_v29  ;;  %v43_v48 = vld [vmem:[%s1853_s0 + $0xb0] sm:$0xff]  ;;  %v77_v50 = vld [vmem:[%s1853_s0 + $0x1c0] sm:$0xff]  ;;  %v44_v51 = vld [vmem:[%s1853_s0 + $0xb8] sm:$0xff] }
  0x23   :  { %1262 = vmatprep.mubr.msk.f32.mxu1 %vm97_vm1, %v67_v30  ;;  %v45_v52 = vld [vmem:[%s1853_s0 + $0xc0] sm:$0xff]  ;;  %v78_v53 = vld [vmem:[%s1853_s0 + $0x1c8] sm:$0xff]  ;;  %v79_v54 = vld [vmem:[%s1853_s0 + $0x1d0] sm:$0xff]  ;;  %p1321_p4 = pnand %p1320_p3, %p1314_p0 }
  0x24   :  { %1212 = vmatmul.mubr.msk.f32.gmra.mxu0 %vm97_vm1, %v34_v31  ;;  %v46_v55 = vld [vmem:[%s1853_s0 + $0xc8] sm:$0xff]  ;;  %v47_v56 = vld [vmem:[%s1853_s0 + $0xd0] sm:$0xff]  ;;  %v80_v57 = vld [vmem:[%s1853_s0 + $0x1d8] sm:$0xff] }
  0x25   :  { %1214 = vmatprep.mubr.msk.f32.mxu0 %vm97_vm1, %v35_v32  ;;  %v81_v58 = vld [vmem:[%s1853_s0 + $0x1e0] sm:$0xff]  ;;  %v48_v59 = vld [vmem:[%s1853_s0 + $0xd8] sm:$0xff]  ;;  %v82_v61 = vld [vmem:[%s1853_s0 + $0x1e8] sm:$0xff] }
  0x26   :  { %1263 = vmatmul.mubr.msk.f32.gmra.mxu1 %vm97_vm1, %v68_v33  ;;  %v49_v60 = vld [vmem:[%s1853_s0 + $0xe0] sm:$0xff]  ;;  %v83_v62 = vld [vmem:[%s1853_s0 + $0x1f0] sm:$0xff]  ;;  %v50_v63 = vld [vmem:[%s1853_s0 + $0xe8] sm:$0xff] }
  0x27   :  { %1265 = vmatprep.mubr.msk.f32.mxu1 %vm97_vm1, %v69_v34  ;;  %v51_v0 = vld [vmem:[%s1853_s0 + $0xf0] sm:$0xff]  ;;  %v84_v1 = vld [vmem:[%s1853_s0 + $0x1f8] sm:$0xff]  ;;  %v53_v3 = vld [vmem:[%s1853_s0 + $0x100] sm:$0xff] }
  0x28   :  { %1215 = vmatmul.mubr.msk.f32.gmra.mxu0 %vm97_vm1, %v36_v35  ;;  %v52_v2 = vld [vmem:[%s1853_s0 + $0xf8] sm:$0xff]  ;;  %v54_v4 = vld [vmem:[%s1853_s0 + $0x108] sm:$0xff]  ;;  %v922_v7 = vld [vmem:[%s1856_s3 + $0x10] sm:$0xff] }
  0x29   :  { %1217 = vmatprep.mubr.msk.f32.mxu0 %vm97_vm1, %v37_v36  ;;  %v923_v5 = vld [vmem:[%s1856_s3 + $0x18] sm:$0xff]  ;;  %v921_v8 = vld [vmem:[%s1856_s3 + $0x8] sm:$0xff]  ;;  %v920_v9 = vld [vmem:[%s1856_s3] sm:$0xff] }
  0x2a   :  { %1266 = vmatmul.mubr.msk.f32.gmra.mxu1 %vm97_vm1, %v70_v37  ;;  %v1658_v19 = vld [vmem:[%s1855_s2] ss:$0 sm:$0xff] }
  0x2b   :  { %1268 = vmatprep.mubr.msk.f32.mxu1 %vm97_vm1, %v71_v38  ;;  %1290 = vmatpush3.msra.mxu1 %v923_v5 }
  0x2c   :  { %1218 = vmatmul.mubr.msk.f32.gmra.mxu0 %vm97_vm1, %v38_v39  ;;  %1291 = vmatprep.subr.mxu1 %v1335_v6 }
  0x2d   :  { %1220 = vmatprep.mubr.msk.f32.mxu0 %vm97_vm1, %v39_v40  ;;  %1292 = vmatpush3.msra.mxu1 %v922_v7 }
  0x2e   :  { %1269 = vmatmul.mubr.msk.f32.gmra.mxu1 %vm97_vm1, %v72_v41  ;;  %1293 = vmatprep.subr.mxu1 %v1335_v6 }
  0x2f   :  { %1271 = vmatprep.mubr.msk.f32.mxu1 %vm97_vm1, %v73_v42  ;;  %1294 = vmatpush3.msra.mxu1 %v921_v8 }
  0x30   :  { %1221 = vmatmul.mubr.msk.f32.gmra.mxu0 %vm97_vm1, %v40_v43  ;;  %1295 = vmatprep.subr.mxu1 %v1335_v6 }
  0x31   :  { %1223 = vmatprep.mubr.msk.f32.mxu0 %vm97_vm1, %v41_v44  ;;  %1296 = vmatpush3.msra.mxu1 %v920_v9 }
  0x32   :  { %1272 = vmatmul.mubr.msk.f32.gmra.mxu1 %vm97_vm1, %v74_v45 }
  0x33   :  { %1274 = vmatprep.mubr.msk.f32.mxu1 %vm97_vm1, %v75_v46 }
  0x34   :  { %1224 = vmatmul.mubr.msk.f32.gmra.mxu0 %vm97_vm1, %v42_v47 }
  0x35   :  { %1226 = vmatprep.mubr.msk.f32.mxu0 %vm97_vm1, %v43_v48 }
  0x36   :  { %1275 = vmatmul.mubr.msk.f32.gmra.mxu1 %vm97_vm1, %v76_v49 }
  0x37   :  { %1277 = vmatprep.mubr.msk.f32.mxu1 %vm97_vm1, %v77_v50 }
  0x38   :  { %1227 = vmatmul.mubr.msk.f32.gmra.mxu0 %vm97_vm1, %v44_v51 }
  0x39   :  { %1229 = vmatprep.mubr.msk.f32.mxu0 %vm97_vm1, %v45_v52 }
  0x3a   :  { %1278 = vmatmul.mubr.msk.f32.gmra.mxu1 %vm97_vm1, %v78_v53 }
  0x3b   :  { %1280 = vmatprep.mubr.msk.f32.mxu1 %vm97_vm1, %v79_v54 }
  0x3c   :  { %1230 = vmatmul.mubr.msk.f32.gmra.mxu0 %vm97_vm1, %v46_v55 }
  0x3d   :  { %1232 = vmatprep.mubr.msk.f32.mxu0 %vm97_vm1, %v47_v56 }
  0x3e   :  { %1281 = vmatmul.mubr.msk.f32.gmra.mxu1 %vm97_vm1, %v80_v57 }
  0x3f   :  { %1283 = vmatprep.mubr.msk.f32.mxu1 %vm97_vm1, %v81_v58 }
  0x40   :  { %1233 = vmatmul.mubr.msk.f32.gmra.mxu0 %vm97_vm1, %v48_v59 }
  0x41   :  { %1235 = vmatprep.mubr.msk.f32.mxu0 %vm97_vm1, %v49_v60 }
  0x42   :  { %1284 = vmatmul.mubr.msk.f32.gmra.mxu1 %vm97_vm1, %v82_v61 }
  0x43   :  { %1286 = vmatprep.mubr.msk.f32.mxu1 %vm97_vm1, %v83_v62 }
  0x44   :  { %1236 = vmatmul.mubr.msk.f32.gmra.mxu0 %vm97_vm1, %v50_v63 }
  0x45   :  { %1238 = vmatprep.mubr.msk.f32.mxu0 %vm97_vm1, %v51_v0 }
  0x46   :  { %1287 = vmatmul.mubr.msk.f32.gmra.mxu1 %vm97_vm1, %v84_v1 }
  0x47   :  { %1297 = vmatprep.mubr.msk.f32.mxu1 %vm1336_vm2, %v1335_v6 }
  0x48   :  { %1239 = vmatmul.mubr.msk.f32.gmra.mxu0 %vm97_vm1, %v52_v2 }
  0x49   :  { %1241 = vmatprep.mubr.msk.f32.mxu0 %vm97_vm1, %v53_v3 }
  0x4c   :  { %1242 = vmatmul.mubr.msk.f32.gmra.mxu0 %vm97_vm1, %v54_v4 }
  0xcc   :  { %v1195_v10 = vpop.f32.mrf.mxu0 }
  0xcd   :  { %v366_v23 = vadd.f32 %v1195_v10, %v1658_v19 }
  0xce   :  { %v360_v11 = vpop.f32.mrf.mxu0  ;;  %v1246_v12 = vpop.f32.mrf.mxu1 }
  0xcf   :  { %v361_v20 = vadd.f32 %v1658_v19, %v360_v11  ;;  %v680_v30 = vmax.f32 %v366_v23, 0.0  ;;  %v536_v41 = vadd.f32 %v1246_v12, %v1658_v19 }
  0xd0   :  { %v1198_v13 = vpop.f32.mrf.mxu0  ;;  %v530_v14 = vpop.f32.mrf.mxu1 }
  0xd1   :  { %v679_v27 = vmax.f32 %v361_v20, 0.0  ;;  %v376_v31 = vadd.f32 %v1198_v13, %v1658_v19  ;;  %v745_v43 = vsel %vm743_vm3, %v680_v30, 0.0  ;;  %v531_v58 = vadd.f32 %v1658_v19, %v530_v14 }
  0xd2   :  { %v370_v15 = vpop.f32.mrf.mxu0  ;;  %v1651_v16 = vpop.f32.mrf.mxu1  ;;  %v714_v61 = vmax.f32 %v536_v41, 0.0 }
  0xd3   :  { %v371_v24 = vadd.f32 %v1658_v19, %v370_v15  ;;  %v744_v36 = vsel %vm743_vm3, %v679_v27, 0.0  ;;  %v682_v44 = vmax.f32 %v376_v31, 0.0  ;;  %v713_v13 = vmax.f32 %v531_v58, 0.0 }
  0xd4   :  { %v1201_v17 = vpop.f32.mrf.mxu0  ;;  %v1653_v18 = vpop.f32.mrf.mxu1  ;;  %v746_v49 = vadd.f32 %v745_v43, %v744_v36  ;;  %v1697_v27 = vsel %vm743_vm3, %v714_v61, 0.0 }
  0xd5   :  { %v681_v32 = vmax.f32 %v371_v24, 0.0  ;;  %v749_v60 = vsel %vm743_vm3, %v682_v44, 0.0  ;;  %v386_v1 = vadd.f32 %v1201_v17, %v1658_v19 }
  0xd6   :  { %v380_v21 = vpop.f32.mrf.mxu0  ;;  %v1661_v22 = vpop.f32.mrf.mxu1 }
  0xd7   :  { %v381_v40 = vadd.f32 %v1658_v19, %v380_v21  ;;  %v747_v45 = vsel %vm743_vm3, %v681_v32, 0.0  ;;  %v684_v24 = vmax.f32 %v386_v1, 0.0 }
  0xd8   :  { %v1665_v25 = vpop.f32.mrf.mxu0  ;;  %v1667_v26 = vpop.f32.mrf.mxu1  ;;  %v748_v56 = vadd.f32 %v747_v45, %v746_v49 }
  0xd9   :  { %v683_v57 = vmax.f32 %v381_v40, 0.0  ;;  %v1707_v40 = vsel %vm743_vm3, %v713_v13, 0.0 }
  0xda   :  { %v390_v28 = vpop.f32.mrf.mxu0  ;;  %v1255_v29 = vpop.f32.mrf.mxu1  ;;  %v750_v11 = vadd.f32 %v749_v60, %v748_v56 }
  0xdb   :  { %v566_v35 = vadd.f32 %v1255_v29, %v1658_v19  ;;  %v751_v12 = vsel %vm743_vm3, %v683_v57, 0.0  ;;  %v391_v14 = vadd.f32 %v1658_v19, %v390_v28 }
  0xdc   :  { %v1207_v33 = vpop.f32.mrf.mxu0  ;;  %v560_v34 = vpop.f32.mrf.mxu1  ;;  %v752_v36 = vadd.f32 %v751_v12, %v750_v11 }
  0xdd   :  { %v561_v38 = vadd.f32 %v1658_v19, %v560_v34  ;;  %v406_v46 = vadd.f32 %v1207_v33, %v1658_v19  ;;  %v720_v50 = vmax.f32 %v566_v35, 0.0  ;;  %v685_v41 = vmax.f32 %v391_v14, 0.0 }
  0xde   :  { %v400_v37 = vpop.f32.mrf.mxu0  ;;  %v1258_v39 = vpop.f32.mrf.mxu1 }
  0xdf   :  { %v401_v42 = vadd.f32 %v1658_v19, %v400_v37  ;;  %v719_v53 = vmax.f32 %v561_v38, 0.0  ;;  %v688_v62 = vmax.f32 %v406_v46, 0.0  ;;  %v850_v3 = vsel %vm743_vm3, %v720_v50, 0.0 }
  0xe0   :  { %v1210_v47 = vpop.f32.mrf.mxu0  ;;  %v570_v48 = vpop.f32.mrf.mxu1  ;;  %v576_v4 = vadd.f32 %v1258_v39, %v1658_v19  ;;  %v1703_v37 = vadd.f32 %v1651_v16, %v1658_v19  ;;  %v753_v46 = vsel %vm743_vm3, %v684_v24, 0.0  ;;  %v1716_v16 = vadd.f32 %v1665_v25, %v1658_v19 }
  0xe1   :  { %v687_v51 = vmax.f32 %v401_v42, 0.0  ;;  %v571_v54 = vadd.f32 %v1658_v19, %v570_v48  ;;  %v416_v6 = vadd.f32 %v1210_v47, %v1658_v19  ;;  %v849_v7 = vsel %vm743_vm3, %v719_v53, 0.0 }
  0xe2   :  { %v410_v52 = vpop.f32.mrf.mxu0  ;;  %v1261_v55 = vpop.f32.mrf.mxu1  ;;  %v766_v15 = vsel %vm743_vm3, %v688_v62, 0.0  ;;  %v851_v30 = vadd.f32 %v850_v3, %v849_v7  ;;  %v722_v32 = vmax.f32 %v576_v4, 0.0  ;;  %v1711_v42 = vadd.f32 %v1658_v19, %v1653_v18 }
  0xe3   :  { %v411_v59 = vadd.f32 %v1658_v19, %v410_v52  ;;  %v765_v5 = vsel %vm743_vm3, %v687_v51, 0.0  ;;  %v721_v9 = vmax.f32 %v571_v54, 0.0  ;;  %v690_v31 = vmax.f32 %v416_v6, 0.0 }
  0xe4   :  { %v1213_v63 = vpop.f32.mrf.mxu0  ;;  %v580_v0 = vpop.f32.mrf.mxu1  ;;  %v767_v29 = vadd.f32 %v766_v15, %v765_v5  ;;  %v586_v48 = vadd.f32 %v1261_v55, %v1658_v19  ;;  %v854_v50 = vsel %vm743_vm3, %v722_v32, 0.0  ;;  %v754_v54 = vadd.f32 %v753_v46, %v752_v36 }
  0xe5   :  { %v689_v2 = vmax.f32 %v411_v59, 0.0  ;;  %v852_v33 = vsel %vm743_vm3, %v721_v9, 0.0  ;;  %v581_v28 = vadd.f32 %v1658_v19, %v580_v0  ;;  %v426_v39 = vadd.f32 %v1213_v63, %v1658_v19 }
  0xe6   :  { %v420_v8 = vpop.f32.mrf.mxu0  ;;  %v1689_v10 = vpop.f32.mrf.mxu1  ;;  %v853_v47 = vadd.f32 %v852_v33, %v851_v30  ;;  %v770_v49 = vsel %vm743_vm3, %v690_v31, 0.0  ;;  %v755_v25 = vsel %vm743_vm3, %v685_v41, 0.0  ;;  %v716_v59 = vmax.f32 %v1703_v37, 0.0 }
  0xe7   :  { %v768_v17 = vsel %vm743_vm3, %v689_v2, 0.0  ;;  %v421_v20 = vadd.f32 %v1658_v19, %v420_v8  ;;  %v723_v18 = vmax.f32 %v581_v28, 0.0  ;;  %v692_v56 = vmax.f32 %v426_v39, 0.0 }
  0xe8   :  { %v1216_v21 = vpop.f32.mrf.mxu0  ;;  %v590_v23 = vpop.f32.mrf.mxu1  ;;  %v769_v38 = vadd.f32 %v768_v17, %v767_v29  ;;  %v686_v63 = vmax.f32 %v1716_v16, 0.0  ;;  %v724_v0 = vmax.f32 %v586_v48, 0.0  ;;  %v855_v1 = vadd.f32 %v854_v50, %v853_v47 }
  0xe9   :  { %v691_v43 = vmax.f32 %v421_v20, 0.0  ;;  %v856_v4 = vsel %vm743_vm3, %v723_v18, 0.0  ;;  %v756_v9 = vadd.f32 %v755_v25, %v754_v54  ;;  %v774_v11 = vsel %vm743_vm3, %v692_v56, 0.0 }
  0xea   :  { %v430_v34 = vpop.f32.mrf.mxu0  ;;  %v1267_v35 = vpop.f32.mrf.mxu1  ;;  %v771_v57 = vadd.f32 %v770_v49, %v769_v38  ;;  %v591_v20 = vadd.f32 %v1658_v19, %v590_v23  ;;  %v436_v30 = vadd.f32 %v1216_v21, %v1658_v19  ;;  %v858_v31 = vsel %vm743_vm3, %v724_v0, 0.0 }
  0xeb   :  { %v772_v55 = vsel %vm743_vm3, %v691_v43, 0.0  ;;  %v431_v60 = vadd.f32 %v1658_v19, %v430_v34  ;;  %v606_v6 = vadd.f32 %v1267_v35, %v1658_v19  ;;  %v857_v32 = vadd.f32 %v856_v4, %v855_v1 }
  0xec   :  { %v1219_v44 = vpop.f32.mrf.mxu0  ;;  %v600_v45 = vpop.f32.mrf.mxu1  ;;  %v773_v12 = vadd.f32 %v772_v55, %v771_v57  ;;  %v596_v23 = vadd.f32 %v1689_v10, %v1658_v19  ;;  %v725_v46 = vmax.f32 %v591_v20, 0.0  ;;  %v715_v49 = vmax.f32 %v1711_v42, 0.0 }
  0xed   :  { %v446_v51 = vadd.f32 %v1219_v44, %v1658_v19  ;;  %v601_v7 = vadd.f32 %v1658_v19, %v600_v45  ;;  %v693_v14 = vmax.f32 %v431_v60, 0.0  ;;  %v728_v28 = vmax.f32 %v606_v6, 0.0 }
  0xee   :  { %v440_v52 = vpop.f32.mrf.mxu0  ;;  %v1270_v53 = vpop.f32.mrf.mxu1  ;;  %v775_v41 = vadd.f32 %v774_v11, %v773_v12  ;;  %v694_v50 = vmax.f32 %v436_v30, 0.0  ;;  %v757_v25 = vsel %vm743_vm3, %v686_v63, 0.0  ;;  %v859_v60 = vadd.f32 %v858_v31, %v857_v32 }
  0xef   :  { %v441_v58 = vadd.f32 %v1658_v19, %v440_v52  ;;  %v696_v3 = vmax.f32 %v446_v51, 0.0  ;;  %v727_v35 = vmax.f32 %v601_v7, 0.0  ;;  %v776_v44 = vsel %vm743_vm3, %v693_v14, 0.0 }
  0xf0   :  { %v1222_v61 = vpop.f32.mrf.mxu0  ;;  %v610_v62 = vpop.f32.mrf.mxu1  ;;  %v616_v18 = vadd.f32 %v1270_v53, %v1658_v19  ;;  %v871_v52 = vsel %vm743_vm3, %v728_v28, 0.0  ;;  %v777_v55 = vadd.f32 %v776_v44, %v775_v41  ;;  %v726_v0 = vmax.f32 %v596_v23, 0.0 }
  0xf1   :  { %v695_v2 = vmax.f32 %v441_v58, 0.0  ;;  %v456_v17 = vadd.f32 %v1222_v61, %v1658_v19  ;;  %v787_v34 = vsel %vm743_vm3, %v696_v3, 0.0  ;;  %v611_v38 = vadd.f32 %v1658_v19, %v610_v62 }
  0xf2   :  { %v450_v5 = vpop.f32.mrf.mxu0  ;;  %v1731_v8 = vpop.f32.mrf.mxu1  ;;  %v870_v10 = vsel %vm743_vm3, %v727_v35, 0.0  ;;  %v1757_v62 = vadd.f32 %v757_v25, %v756_v9  ;;  %v860_v53 = vsel %vm743_vm3, %v725_v46, 0.0  ;;  %v778_v4 = vsel %vm743_vm3, %v694_v50, 0.0 }
  0xf3   :  { %v451_v13 = vadd.f32 %v1658_v19, %v450_v5  ;;  %v786_v15 = vsel %vm743_vm3, %v695_v2, 0.0  ;;  %v698_v45 = vmax.f32 %v456_v17, 0.0  ;;  %v729_v56 = vmax.f32 %v611_v38, 0.0 }
  0xf4   :  { %v1225_v24 = vpop.f32.mrf.mxu0  ;;  %v620_v29 = vpop.f32.mrf.mxu1  ;;  %v788_v43 = vadd.f32 %v787_v34, %v786_v15  ;;  %v872_v5 = vadd.f32 %v871_v52, %v870_v10  ;;  %v730_v7 = vmax.f32 %v616_v18, 0.0  ;;  %v1766_v15 = vadd.f32 %v778_v4, %v777_v55 }
  0xf5   :  { %v697_v33 = vmax.f32 %v451_v13, 0.0  ;;  %v466_v61 = vadd.f32 %v1225_v24, %v1658_v19  ;;  %v791_v1 = vsel %vm743_vm3, %v698_v45, 0.0  ;;  %v873_v11 = vsel %vm743_vm3, %v729_v56, 0.0 }
  0xf6   :  { %v460_v36 = vpop.f32.mrf.mxu0  ;;  %v1742_v39 = vpop.f32.mrf.mxu1  ;;  %v621_v9 = vadd.f32 %v1658_v19, %v620_v29  ;;  %v861_v17 = vadd.f32 %v860_v53, %v859_v60  ;;  %v626_v24 = vadd.f32 %v1731_v8, %v1658_v19  ;;  %v759_v30 = vrot.slane %v1757_v62, 4 }
  0xf7   :  { %v789_v21 = vsel %vm743_vm3, %v697_v33, 0.0  ;;  %v461_v16 = vadd.f32 %v1658_v19, %v460_v36  ;;  %v700_v20 = vmax.f32 %v466_v61, 0.0  ;;  %v862_v31 = vsel %vm743_vm3, %v726_v0, 0.0 }
  0xf8   :  { %v1228_v47 = vpop.f32.mrf.mxu0  ;;  %v1749_v48 = vpop.f32.mrf.mxu1  ;;  %v790_v51 = vadd.f32 %v789_v21, %v788_v43  ;;  %v874_v35 = vadd.f32 %v873_v11, %v872_v5  ;;  %v875_v38 = vsel %vm743_vm3, %v730_v7, 0.0  ;;  %v731_v41 = vmax.f32 %v621_v9, 0.0 }
  0xf9   :  { %v699_v54 = vmax.f32 %v461_v16, 0.0  ;;  %v476_v29 = vadd.f32 %v1228_v47, %v1658_v19  ;;  %v780_v44 = vrot.slane %v1766_v15, 4  ;;  %v1778_v45 = vadd.f32 %v862_v31, %v861_v17 }
  0xfa   :  { %v470_v57 = vpop.f32.mrf.mxu0  ;;  %v1279_v58 = vpop.f32.mrf.mxu1  ;;  %v792_v6 = vadd.f32 %v791_v1, %v790_v51  ;;  %v795_v46 = vsel %vm743_vm3, %v700_v20, 0.0  ;;  %v732_v16 = vmax.f32 %v626_v24, 0.0  ;;  %v877_v25 = vsel %vm743_vm3, %v731_v41, 0.0 }
  0xfb   :  { %v793_v63 = vsel %vm743_vm3, %v699_v54, 0.0  ;;  %v471_v32 = vadd.f32 %v1658_v19, %v470_v57  ;;  %v646_v18 = vadd.f32 %v1279_v58, %v1658_v19  ;;  %v702_v10 = vmax.f32 %v476_v29, 0.0 }
  0xfc   :  { %v1231_v2 = vpop.f32.mrf.mxu0  ;;  %v640_v3 = vpop.f32.mrf.mxu1  ;;  %v794_v28 = vadd.f32 %v793_v63, %v792_v6  ;;  %v876_v57 = vadd.f32 %v875_v38, %v874_v35  ;;  %v631_v60 = vadd.f32 %v1658_v19, %v1749_v48  ;;  %v879_v6 = vsel %vm743_vm3, %v732_v16, 0.0 }
  0xfd   :  { %v486_v12 = vadd.f32 %v1231_v2, %v1658_v19  ;;  %v701_v50 = vmax.f32 %v471_v32, 0.0  ;;  %v641_v58 = vadd.f32 %v1658_v19, %v640_v3  ;;  %v736_v63 = vmax.f32 %v646_v18, 0.0 }
  0xfe   :  { %v480_v13 = vpop.f32.mrf.mxu0  ;;  %v1282_v14 = vpop.f32.mrf.mxu1  ;;  %v796_v54 = vadd.f32 %v795_v46, %v794_v28  ;;  %v636_v48 = vadd.f32 %v1742_v39, %v1658_v19  ;;  %v733_v28 = vmax.f32 %v631_v60, 0.0 }
  0xff   :  { %v481_v33 = vadd.f32 %v1658_v19, %v480_v13  ;;  %v704_v36 = vmax.f32 %v486_v12, 0.0  ;;  %v797_v5 = vsel %vm743_vm3, %v701_v50, 0.0  ;;  %v878_v12 = vadd.f32 %v877_v25, %v876_v57 }
 0x100   :  { %v1234_v34 = vpop.f32.mrf.mxu0  ;;  %v650_v21 = vpop.f32.mrf.mxu1  ;;  %v656_v13 = vadd.f32 %v1282_v14, %v1658_v19  ;;  %v735_v20 = vmax.f32 %v641_v58, 0.0  ;;  %v892_v35 = vsel %vm743_vm3, %v736_v63, 0.0  ;;  %v734_v41 = vmax.f32 %v636_v48, 0.0 }
 0x101   :  { %v703_v43 = vmax.f32 %v481_v33, 0.0  ;;  %v496_v8 = vadd.f32 %v1234_v34, %v1658_v19  ;;  %v808_v56 = vsel %vm743_vm3, %v704_v36, 0.0  ;;  %v799_v33 = vsel %vm743_vm3, %v702_v10, 0.0 }
 0x102   :  { %v490_v23 = vpop.f32.mrf.mxu0  ;;  %v1285_v1 = vpop.f32.mrf.mxu1  ;;  %v798_v34 = vadd.f32 %v797_v5, %v796_v54  ;;  %v891_v36 = vsel %vm743_vm3, %v735_v20, 0.0  ;;  %v651_v16 = vadd.f32 %v1658_v19, %v650_v21 }
 0x103   :  { %v807_v47 = vsel %vm743_vm3, %v703_v43, 0.0  ;;  %v491_v51 = vadd.f32 %v1658_v19, %v490_v23  ;;  %v706_v55 = vmax.f32 %v496_v8, 0.0  ;;  %v880_v43 = vadd.f32 %v879_v6, %v878_v12 }
 0x104   :  { %v1237_v52 = vpop.f32.mrf.mxu0  ;;  %v809_v53 = vadd.f32 %v808_v56, %v807_v47  ;;  %v660_v32 = vpop.f32.mrf.mxu1  ;;  %v738_v23 = vmax.f32 %v656_v13, 0.0  ;;  %v666_v47 = vadd.f32 %v1285_v1, %v1658_v19  ;;  %v893_v10 = vadd.f32 %v892_v35, %v891_v36 }
 0x105   :  { %v705_v61 = vmax.f32 %v491_v51, 0.0  ;;  %v506_v2 = vadd.f32 %v1237_v52, %v1658_v19  ;;  %v812_v17 = vsel %vm743_vm3, %v706_v55, 0.0  ;;  %v881_v52 = vsel %vm743_vm3, %v733_v28, 0.0 }
 0x106   :  { %v500_v0 = vpop.f32.mrf.mxu0  ;;  %v1288_v18 = vpop.f32.mrf.mxu1  ;;  %v737_v25 = vmax.f32 %v651_v16, 0.0  ;;  %v661_v60 = vadd.f32 %v1658_v19, %v660_v32  ;;  %v896_v21 = vsel %vm743_vm3, %v738_v23, 0.0  ;;  %v883_v6 = vsel %vm743_vm3, %v734_v41, 0.0 }
 0x107   :  { %v501_v4 = vadd.f32 %v1658_v19, %v500_v0  ;;  %v810_v7 = vsel %vm743_vm3, %v705_v61, 0.0  ;;  %v708_v3 = vmax.f32 %v506_v2, 0.0  ;;  %v800_v61 = vadd.f32 %v799_v33, %v798_v34 }
 0x108   :  { %v1240_v11 = vpop.f32.mrf.mxu0  ;;  %v811_v9 = vadd.f32 %v810_v7, %v809_v53  ;;  %v740_v0 = vmax.f32 %v666_v47, 0.0  ;;  %v894_v1 = vsel %vm743_vm3, %v737_v25, 0.0  ;;  %v670_v5 = vpop.f32.mrf.mxu1  ;;  %v882_v7 = vadd.f32 %v881_v52, %v880_v43 }
 0x109   :  { %v707_v24 = vmax.f32 %v501_v4, 0.0  ;;  %v516_v14 = vadd.f32 %v1240_v11, %v1658_v19  ;;  %v816_v46 = vsel %vm743_vm3, %v708_v3, 0.0  ;;  %v739_v4 = vmax.f32 %v661_v60, 0.0 }
 0x10a   :  { %v510_v31 = vpop.f32.mrf.mxu0  ;;  %v813_v29 = vadd.f32 %v812_v17, %v811_v9  ;;  %v895_v63 = vadd.f32 %v894_v1, %v893_v10  ;;  %v676_v13 = vadd.f32 %v1288_v18, %v1658_v19  ;;  %v801_v17 = vrot.slane %v800_v61, 4 }
 0x10b   :  { %v814_v39 = vsel %vm743_vm3, %v707_v24, 0.0  ;;  %v511_v50 = vadd.f32 %v1658_v19, %v510_v31  ;;  %v710_v57 = vmax.f32 %v516_v14, 0.0  ;;  %v898_v48 = vsel %vm743_vm3, %v739_v4, 0.0 }
 0x10c   :  { %v1243_v38 = vpop.f32.mrf.mxu0  ;;  %v815_v8 = vadd.f32 %v814_v39, %v813_v29  ;;  %v897_v20 = vadd.f32 %v896_v21, %v895_v63  ;;  %v671_v24 = vadd.f32 %v1658_v19, %v670_v5  ;;  %v900_v31 = vsel %vm743_vm3, %v740_v0, 0.0 }
 0x10d   :  { %v526_v56 = vadd.f32 %v1243_v38, %v1658_v19  ;;  %v709_v55 = vmax.f32 %v511_v50, 0.0  ;;  %v820_v12 = vsel %vm743_vm3, %v710_v57, 0.0  ;;  %v742_v34 = vmax.f32 %v676_v13, 0.0 }
 0x10e   :  { %v520_v51 = vpop.f32.mrf.mxu0  ;;  %v817_v54 = vadd.f32 %v816_v46, %v815_v8  ;;  %v884_v28 = vadd.f32 %v883_v6, %v882_v7  ;;  %v899_v35 = vadd.f32 %v898_v48, %v897_v20  ;;  %v556_v39 = vadd.f32 %v1661_v22, %v1658_v19 }
 0x10f   :  { %v521_v53 = vadd.f32 %v1658_v19, %v520_v51  ;;  %v818_v2 = vsel %vm743_vm3, %v709_v55, 0.0  ;;  %v712_v58 = vmax.f32 %v526_v56, 0.0  ;;  %v551_v14 = vadd.f32 %v1658_v19, %v1667_v26 }
 0x110   :  { %v819_v11 = vadd.f32 %v818_v2, %v817_v54  ;;  %v781_v38 = vadd.f32 %v780_v44, %v1766_v15  ;;  %v741_v41 = vmax.f32 %v671_v24, 0.0  ;;  %v760_v43 = vadd.f32 %v759_v30, %v1757_v62 }
 0x111   :  { %v711_v9 = vmax.f32 %v521_v53, 0.0  ;;  %v829_v32 = vsel %vm743_vm3, %v712_v58, 0.0  ;;  %v802_v8 = vadd.f32 %v801_v17, %v800_v61  ;;  %v901_v46 = vadd.f32 %v900_v31, %v899_v35 }
 0x112   :  { %v821_v3 = vadd.f32 %v820_v12, %v819_v11  ;;  %v864_v16 = vrot.slane %v1778_v45, 4  ;;  %v904_v22 = vsel %vm743_vm3, %v742_v34, 0.0  ;;  %v902_v19 = vsel %vm743_vm3, %v741_v41, 0.0 }
 0x113   :  { %v828_v33 = vsel %vm743_vm3, %v711_v9, 0.0  ;;  %v885_v26 = vrot.slane %v884_v28, 4  ;;  %v903_v15 = vadd.f32 %v902_v19, %v901_v46  ;;  %v835_v44 = vsel %vm743_vm3, %v715_v49, 0.0 }
 0x114   :  { %v822_v29 = vrot.slane %v821_v3, 4  ;;  %v830_v36 = vadd.f32 %v829_v32, %v828_v33  ;;  %v717_v62 = vmax.f32 %v551_v14, 0.0  ;;  %v782_v30 = vrot.slane %v781_v38, 2 }
 0x115   :  { %v803_v51 = vrot.slane %v802_v8, 2  ;;  %v905_v52 = vadd.f32 %v904_v22, %v903_v15  ;;  %v761_v10 = vrot.slane %v760_v43, 2  ;;  %v718_v54 = vmax.f32 %v556_v39, 0.0 }
 0x116   :  { %v832_v23 = vadd.f32 %v1707_v40, %v830_v36  ;;  %v823_v50 = vadd.f32 %v822_v29, %v821_v3  ;;  %v837_v40 = vsel %vm743_vm3, %v716_v59, 0.0  ;;  %v865_v56 = vadd.f32 %v864_v16, %v1778_v45 }
 0x117   :  { %v906_v55 = vrot.slane %v905_v52, 4  ;;  %v839_v42 = vsel %vm743_vm3, %v717_v62, 0.0  ;;  %v783_v49 = vadd.f32 %v782_v30, %v781_v38  ;;  %v804_v60 = vadd.f32 %v803_v51, %v802_v8 }
 0x118   :  { %v834_v47 = vadd.f32 %v1697_v27, %v832_v23  ;;  %v824_v57 = vrot.slane %v823_v50, 2  ;;  %v886_v27 = vadd.f32 %v885_v26, %v884_v28  ;;  %v762_v37 = vadd.f32 %v761_v10, %v760_v43 }
 0x119   :  { %v907_v21 = vadd.f32 %v906_v55, %v905_v52  ;;  %v841_v59 = vsel %vm743_vm3, %v718_v54, 0.0  ;;  %v866_v0 = vrot.slane %v865_v56, 2  ;;  %v784_v58 = vrot.slane %v783_v49, 1 }
 0x11a   :  { %v836_v18 = vadd.f32 %v835_v44, %v834_v47  ;;  %v825_v53 = vadd.f32 %v824_v57, %v823_v50  ;;  %v887_v1 = vrot.slane %v886_v27, 2  ;;  %v805_v45 = vrot.slane %v804_v60, 1  ;;  %v1107_v44 = vld [vmem:[%s1857_s4] ss:$0 sm:$0xff] }
 0x11b   :  { %v908_v4 = vrot.slane %v907_v21, 2  ;;  %v763_v6 = vrot.slane %v762_v37, 1  ;;  %v867_v7 = vadd.f32 %v866_v0, %v865_v56  ;;  %v785_v48 = vadd.f32 %v784_v58, %v783_v49 }
 0x11c   :  { %v838_v25 = vadd.f32 %v837_v40, %v836_v18  ;;  %v826_v63 = vrot.slane %v825_v53, 1  ;;  %v888_v11 = vadd.f32 %v887_v1, %v886_v27  ;;  %v806_v13 = vadd.f32 %v805_v45, %v804_v60 }
 0x11d   :  { %v909_v9 = vadd.f32 %v908_v4, %v907_v21  ;;  %v764_v3 = vadd.f32 %v763_v6, %v762_v37  ;;  %v868_v20 = vrot.slane %v867_v7, 1  ;;  %v913_v33 = vmul.f32 0.015625, %v785_v48 }
 0x11e   :  { %v840_v61 = vadd.f32 %v839_v42, %v838_v25  ;;  %v827_v24 = vadd.f32 %v826_v63, %v825_v53  ;;  %v889_v31 = vrot.slane %v888_v11, 1  ;;  %v914_v28 = vmul.f32 0.015625, %v806_v13 }
 0x11f   :  { %v910_v34 = vrot.slane %v909_v9, 1  ;;  %v912_v35 = vmul.f32 0.015625, %v764_v3  ;;  %v869_v36 = vadd.f32 %v868_v20, %v867_v7 }
 0x120   :  { %v842_v2 = vadd.f32 %v841_v59, %v840_v61  ;;  %v915_v39 = vmul.f32 0.015625, %v827_v24  ;;  %v890_v14 = vadd.f32 %v889_v31, %v888_v11 }
 0x121   :  { %v940_v41 = vsel %vm939_vm4, %v913_v33, %v912_v35  ;;  %v911_v43 = vadd.f32 %v910_v34, %v909_v9  ;;  %v917_v46 = vmul.f32 0.015625, %v869_v36 }
 0x122   :  { %v843_v5 = vrot.slane %v842_v2, 4  ;;  %v942_v8 = vsel %vm941_vm5, %v914_v28, %v940_v41  ;;  %v918_v50 = vmul.f32 0.015625, %v890_v14 }
 0x123   :  { %v944_v16 = vsel %vm943_vm6, %v915_v39, %v942_v8  ;;  %v919_v19 = vmul.f32 0.015625, %v911_v43 }
 0x124   :  { %v844_v12 = vadd.f32 %v843_v5, %v842_v2 }
 0x126   :  { %v845_v17 = vrot.slane %v844_v12, 2 }
 0x128   :  { %v846_v32 = vadd.f32 %v845_v17, %v844_v12 }
 0x12a   :  { %v847_v29 = vrot.slane %v846_v32, 1 }
 0x12c   :  { %v848_v38 = vadd.f32 %v847_v29, %v846_v32 }
 0x12e   :  { %v916_v23 = vmul.f32 0.015625, %v848_v38 }
 0x130   :  { %v946_v22 = vsel %vm945_vm7, %v916_v23, %v944_v16 }
 0x131   :  { %v948_v26 = vsel %vm947_vm8, %v917_v46, %v946_v22 }
 0x132   :  { %v950_v47 = vsel %vm949_vm9, %v918_v50, %v948_v26 }
 0x133   :  { %v952_v15 = vsel %vm951_vm10, %v919_v19, %v950_v47 }
 0x134   :  { %1298 = vmatmul.mubr.msk.f32.vlgmr.msra.gmra.mxu1 %vm743_vm3, %v952_v15 }
 0x1f4   :  { %v1021_v62 = vpop.f32.mrf.mxu1 }
 0x1f5   :  { %v1022_v30 = vadd.f32 %v1107_v44, %v1021_v62 }
 0x1f6   :  { %v1299_v40 = vpop.f32.mrf.mxu1 }
 0x1f7   :  { %1026 = vst.msk [vmem:[#allocation2] sm:$0xff] %vm1025_vm11, %v1022_v30 }
 0x1f8   :  { %1324 = shalt.err (!%p1321_p4)
}
 0x1f9   :  { %1036 = dma.vmem_to_hbm [thread:$0]  %s1034_s1, 128, %s1858_s5, [#allocation3]  }
 0x1fa   :  { %1333 = dma.done.wait [#allocation3], 128  }
 0x1fb   :  { %1334 = vsyncadd [#allocation3], 4294967168 }
 0x1fc   :  { %1040 = vsyncpa [#allocation3], 1 }

</bundles_post_ra>
